<compile_context>
chip_gen: v6e
topology: v6e:2x2x1
jax: 0.10.0
libtpu: 0.0.40
codegen_flags: <defaults>
</compile_context>

<pallas_src>
import functools

import jax
import jax.numpy as jnp
from jax import lax
from jax.experimental import pallas as pl
from jax.experimental.pallas import tpu as pltpu


# --------------------------------- small helpers ---------------------------------
def _round_up(x, m):
    return (x + m - 1) // m * m


def _padded_bytes(shape, dtype):
    """Approx VMEM bytes of a buffer after (sublane, 128-lane) tile padding."""
    itemsize = jnp.dtype(dtype).itemsize
    sub = {4: 8, 2: 16, 1: 32}.get(itemsize, 8)
    shape = tuple(int(d) for d in shape)
    if len(shape) == 0:
        shape = (1, 1)
    elif len(shape) == 1:
        shape = (1, shape[0])
    lead = 1
    for d in shape[:-2]:
        lead *= d
    return lead * _round_up(shape[-2], sub) * _round_up(shape[-1], 128) * itemsize


def _vmem_limit(nbytes):
    """Explicit scoped-VMEM limit: actual per-step buffers + 50% headroom."""
    return min(int(nbytes * 1.5) + (2 << 20), 100 << 20)


# --------------------- fused kernel: conv + BN stats + affine + act ---------------------
def _fused_kernel(x_ref, w_ref, mask_ref, gamma_ref, beta_ref, o_ref,
                  rhs_ref, conv_ref, sum_ref, ssq_ref, scale_ref, shift_ref,
                  *, K, C_in, W_pad, W_out, H_out, L, count, eps):
    """grid = (phase, n).  phase 0: conv + stats (resident); phase 1: normalize + store.

    x_ref    : (C_in, Lp)   bf16  padded image, spatial flattened on lanes
    w_ref    : (C_out, K*K*C_in) bf16
    mask_ref : (1, L)       f32   1.0 on valid columns, 0.0 on wrap columns
    o_ref    : (C_out, H_out*W_out) f32  compact, lane-dense output block
    rhs_ref  : (K*K*C_in, L) bf16 scratch - stacked shifted windows (one dot)
    conv_ref : (N, C_out, L) f32  scratch - conv outputs resident across the grid
    """
    p = pl.program_id(0)          # phase
    n = pl.program_id(1)          # image index

    @pl.when(p == 0)
    def _conv_phase():
        xp = x_ref[...]                                       # read the image ONCE (bf16)
        # Stack the K*K shifted taps into the contraction dim.
        for t in range(K * K):
            i, j = divmod(t, K)
            s = i * W_pad + j                                 # static flat shift of tap (i, j)
            rhs_ref[t * C_in:(t + 1) * C_in, :] = xp[:, s:s + L]
        # Single MXU matmul: (C_out, K*K*C_in) x (K*K*C_in, L) -> (C_out, L) f32.
        y = jnp.dot(w_ref[...], rhs_ref[...], preferred_element_type=jnp.float32)
        conv_ref[n] = y                                       # stays resident in VMEM

        @pl.when(n == 0)
        def _():
            sum_ref[...] = jnp.zeros_like(sum_ref)
            ssq_ref[...] = jnp.zeros_like(ssq_ref)

        ym = y * mask_ref[...]                                # zero the wrap columns
        sum_ref[...] += jnp.sum(ym, axis=1, keepdims=True)
        ssq_ref[...] += jnp.sum(ym * ym, axis=1, keepdims=True)

    @pl.when(p == 1)
    def _norm_phase():
        @pl.when(n == 0)
        def _():
            inv_cnt = 1.0 / count
            mean = sum_ref[...] * inv_cnt
            var = ssq_ref[...] * inv_cnt - mean * mean        # biased (training-mode BN)
            inv_std = lax.rsqrt(var + eps)                    # EUP
            scale_ref[...] = gamma_ref[...] * inv_std
            shift_ref[...] = beta_ref[...] - mean * gamma_ref[...] * inv_std

        z = conv_ref[n] * scale_ref[...] + shift_ref[...]     # fused affine (2 VPU ops/elt)
        z = jnp.where(z > 0, z, 0.1 * z)                      # LeakyReLU(0.1)
        # Drop wrap columns on VMEM-resident data -> lane-dense compact store.
        # (Static unroll is fine for moderate H_out; see spatial-tiling TODO for huge H.)
        for h in range(H_out):
            o_ref[:, h * W_out:(h + 1) * W_out] = z[:, h * W_pad:h * W_pad + W_out]


# --------------------- fallback pass 1: conv + per-image partial stats ---------------------
def _conv_stats_kernel(x_ref, w_ref, mask_ref, y_ref, sum_ref, ssq_ref, rhs_ref,
                       *, K, C_in, W_pad, L):
    xp = x_ref[...]                                           # (C_in, Lp) bf16
    for t in range(K * K):
        i, j = divmod(t, K)
        s = i * W_pad + j
        rhs_ref[t * C_in:(t + 1) * C_in, :] = xp[:, s:s + L]
    y = jnp.dot(w_ref[...], rhs_ref[...], preferred_element_type=jnp.float32)
    y_ref[...] = y.astype(y_ref.dtype)                        # bf16 inter-pass (halved HBM)
    ym = y * mask_ref[...]
    # Per-image partial stats -> grid axis stays "parallel" (v7x 2-TC split);
    # the O(N*C_out) reduction happens in tiny JAX glue.
    sum_ref[...] = jnp.sum(ym, axis=1, keepdims=True)
    ssq_ref[...] = jnp.sum(ym * ym, axis=1, keepdims=True)


# --------------------- fallback pass 2: fused affine + LeakyReLU ---------------------
def _bn_act_kernel(y_ref, scale_ref, shift_ref, o_ref, *, W_pad, W_out, H_out):
    z = y_ref[...].astype(jnp.float32) * scale_ref[...] + shift_ref[...]
    z = jnp.where(z > 0, z, 0.1 * z)
    for h in range(H_out):
        o_ref[:, h * W_out:(h + 1) * W_out] = z[:, h * W_pad:h * W_pad + W_out]


# --------------------------------------- wrapper ---------------------------------------
def cnn_block_forward(x, weight, gamma, beta, *, stride=1, padding=1, eps=1e-5,
                      force_two_pass=False):
    """x: (N, C_in, H, W); weight: (C_out, C_in, K, K); gamma/beta: (C_out,). Returns f32 NCHW."""
    if stride != 1:
        # TODO(synk): strided conv not implemented in the fused Pallas path.
        raise NotImplementedError("fused Pallas path implements stride=1 only")

    N, C_in, H, W = x.shape
    C_out, _, K, _ = weight.shape
    H_pad, W_pad = H + 2 * padding, W + 2 * padding
    H_out, W_out = H_pad - K + 1, W_pad - K + 1
    L = H_out * W_pad                       # wide flat spatial (keeps wrap columns)
    HW_out = H_out * W_out                  # compact lane-dense output width
    KKC = K * K * C_in
    extra_rows = -(-(K - 1) // W_pad)       # tail rows so every tap window fits
    Lp = (H_pad + extra_rows) * W_pad
    count = float(N * H_out * W_out)

    # --- layout-only preprocessing: ONE fused pad on bf16 + free reshapes ------------
    x_flat = jnp.pad(
        x.astype(jnp.bfloat16),
        ((0, 0), (0, 0), (padding, padding + extra_rows), (padding, padding)),
    ).reshape(N, C_in, Lp)
    # weight -> (C_out, K*K*C_in); column index = (i*K + j)*C_in + ci (matches rhs stacking)
    w2 = jnp.transpose(weight, (0, 2, 3, 1)).reshape(C_out, KKC).astype(jnp.bfloat16)
    gamma2 = gamma.astype(jnp.float32).reshape(C_out, 1)
    beta2 = beta.astype(jnp.float32).reshape(C_out, 1)
    # wrap-column validity mask, hoisted out of the kernel (no per-step modulo)
    mask = jnp.pad(jnp.ones((H_out, W_out), jnp.float32),
                   ((0, 0), (0, W_pad - W_out))).reshape(1, L)

    # --- VMEM budgeting ----------------------------------------------------------------
    per_step_io = 2 * (_padded_bytes((C_in, Lp), jnp.bfloat16)
                       + _padded_bytes((C_out, KKC), jnp.bfloat16)
                       + _padded_bytes((1, L), jnp.float32)
                       + 2 * _padded_bytes((C_out, 1), jnp.float32)
                       + _padded_bytes((C_out, HW_out), jnp.float32))
    fused_scratch = (_padded_bytes((KKC, L), jnp.bfloat16)
                     + _padded_bytes((N, C_out, L), jnp.float32)
                     + 4 * _padded_bytes((C_out, 1), jnp.float32))
    fused_bytes = per_step_io + fused_scratch
    use_fused = (not force_two_pass) and fused_bytes <= 40 * 1024 * 1024  # v7x-safe budget

    if use_fused:
        # ---- single pallas_call, 2-phase grid: no HBM round trip for the conv output ----
        kernel = functools.partial(
            _fused_kernel, K=K, C_in=C_in, W_pad=W_pad, W_out=W_out,
            H_out=H_out, L=L, count=count, eps=eps)
        out_flat = pl.pallas_call(
            kernel,
            grid=(2, N),   # phase-major: all conv/stats steps first, then all normalize steps
            in_specs=(
                # phase 1 re-maps x to the last phase-0 block -> no redundant refetch
                pl.BlockSpec((None, C_in, Lp),
                             lambda p, n: ((1 - p) * n + p * (N - 1), 0, 0)),
                pl.BlockSpec((C_out, KKC), lambda p, n: (0, 0)),      # weights resident
                pl.BlockSpec((1, L), lambda p, n: (0, 0)),            # mask resident
                pl.BlockSpec((C_out, 1), lambda p, n: (0, 0)),        # gamma
                pl.BlockSpec((C_out, 1), lambda p, n: (0, 0)),        # beta
            ),
            # phase 0 parks on block 0; phase 1 writes block n (each block written once).
            out_specs=pl.BlockSpec((None, C_out, HW_out), lambda p, n: (p * n, 0, 0)),
            out_shape=jax.ShapeDtypeStruct((N, C_out, HW_out), jnp.float32),
            scratch_shapes=[
                pltpu.VMEM((KKC, L), jnp.bfloat16),       # stacked-tap RHS
                pltpu.VMEM((N, C_out, L), jnp.float32),   # resident conv outputs
                pltpu.VMEM((C_out, 1), jnp.float32),      # sum
                pltpu.VMEM((C_out, 1), jnp.float32),      # sumsq
                pltpu.VMEM((C_out, 1), jnp.float32),      # scale
                pltpu.VMEM((C_out, 1), jnp.float32),      # shift
            ],
            compiler_params=pltpu.CompilerParams(
                dimension_semantics=("arbitrary", "arbitrary"),
                vmem_limit_bytes=_vmem_limit(fused_bytes)),
        )(x_flat, w2, mask, gamma2, beta2)
        return out_flat.reshape(N, C_out, H_out, W_out)   # free split reshape

    # ---------------- fallback: two-pass path (large resident footprint) ----------------
    # TODO(synk): also tile the spatial axis (row bands with a K-1 halo) via manual DMA
    # so per-image blocks fit v7x's 64 MiB VMEM for very large images.
    kernel1 = functools.partial(_conv_stats_kernel, K=K, C_in=C_in, W_pad=W_pad, L=L)
    p1_bytes = (2 * (_padded_bytes((C_in, Lp), jnp.bfloat16)
                     + _padded_bytes((C_out, KKC), jnp.bfloat16)
                     + _padded_bytes((1, L), jnp.float32)
                     + _padded_bytes((C_out, L), jnp.bfloat16)
                     + 2 * _padded_bytes((C_out, 1), jnp.float32))
                + _padded_bytes((KKC, L), jnp.bfloat16))
    y_wide, psum, pssq = pl.pallas_call(
        kernel1,
        grid=(N,),
        in_specs=(
            pl.BlockSpec((None, C_in, Lp), lambda n: (n, 0, 0)),
            pl.BlockSpec((C_out, KKC), lambda n: (0, 0)),
            pl.BlockSpec((1, L), lambda n: (0, 0)),
        ),
        out_specs=(
            pl.BlockSpec((None, C_out, L), lambda n: (n, 0, 0)),      # bf16 conv output
            pl.BlockSpec((None, C_out, 1), lambda n: (n, 0, 0)),      # per-image sum
            pl.BlockSpec((None, C_out, 1), lambda n: (n, 0, 0)),      # per-image sumsq
        ),
        out_shape=(
            jax.ShapeDtypeStruct((N, C_out, L), jnp.bfloat16),
            jax.ShapeDtypeStruct((N, C_out, 1), jnp.float32),
            jax.ShapeDtypeStruct((N, C_out, 1), jnp.float32),
        ),
        scratch_shapes=[pltpu.VMEM((KKC, L), jnp.bfloat16)],
        compiler_params=pltpu.CompilerParams(
            dimension_semantics=("parallel",),            # independent per image
            vmem_limit_bytes=_vmem_limit(p1_bytes)),
    )(x_flat, w2, mask)

    # ---- tiny O(C_out) glue between passes (plain JAX) ----------------------------
    sums = jnp.sum(psum[:, :, 0], axis=0)
    ssqs = jnp.sum(pssq[:, :, 0], axis=0)
    mean = sums / count
    var = ssqs / count - mean * mean                      # biased var (training-mode BN)
    inv_std = lax.rsqrt(var + eps)
    g32 = gamma.astype(jnp.float32)
    scale = (g32 * inv_std).reshape(C_out, 1)
    shift = (beta.astype(jnp.float32) - mean * g32 * inv_std).reshape(C_out, 1)

    kernel2 = functools.partial(_bn_act_kernel, W_pad=W_pad, W_out=W_out, H_out=H_out)
    p2_bytes = 2 * (_padded_bytes((C_out, L), jnp.bfloat16)
                    + 2 * _padded_bytes((C_out, 1), jnp.float32)
                    + _padded_bytes((C_out, HW_out), jnp.float32))
    out_flat = pl.pallas_call(
        kernel2,
        grid=(N,),
        in_specs=(
            pl.BlockSpec((None, C_out, L), lambda n: (n, 0, 0)),      # flat lane-dense input
            pl.BlockSpec((C_out, 1), lambda n: (0, 0)),
            pl.BlockSpec((C_out, 1), lambda n: (0, 0)),
        ),
        out_specs=pl.BlockSpec((None, C_out, HW_out), lambda n: (n, 0, 0)),  # lane-dense out
        out_shape=jax.ShapeDtypeStruct((N, C_out, HW_out), jnp.float32),
        compiler_params=pltpu.CompilerParams(
            dimension_semantics=("parallel",),
            vmem_limit_bytes=_vmem_limit(p2_bytes)),
    )(y_wide, scale, shift)
    return out_flat.reshape(N, C_out, H_out, W_out)       # free split reshape


# ------------------------- pure-JAX reference (correctness check) -------------------------
def cnn_block_ref(x, weight, gamma, beta, *, stride=1, padding=1):
    y = lax.conv_general_dilated(
        x, weight, window_strides=(stride, stride),
        padding=[(padding, padding), (padding, padding)],
        dimension_numbers=("NCHW", "OIHW", "NCHW"))
    mean = y.mean(axis=(0, 2, 3), keepdims=True)
    var = ((y - mean) ** 2).mean(axis=(0, 2, 3), keepdims=True)
    z = (y - mean) * lax.rsqrt(var + 1e-5)
    z = z * gamma.reshape(1, -1, 1, 1) + beta.reshape(1, -1, 1, 1)
    return jnp.where(z > 0, z, 0.1 * z)


if __name__ == "__main__":
    # CNNBlock(in_channels=4, out_channels=8, kernel_size=3, stride=1, padding=1)
    N, C_in, H, W = 2, 4, 16, 16
    C_out, K, stride, padding = 8, 3, 1, 1

    key = jax.random.PRNGKey(0)
    kx, kw, kg, kb = jax.random.split(key, 4)
    x = jax.random.normal(kx, (N, C_in, H, W), dtype=jnp.float32)
    weight = 0.1 * jax.random.normal(kw, (C_out, C_in, K, K), dtype=jnp.float32)
    gamma = 1.0 + 0.05 * jax.random.normal(kg, (C_out,), dtype=jnp.float32)
    beta = 0.05 * jax.random.normal(kb, (C_out,), dtype=jnp.float32)

    ref = cnn_block_ref(x, weight, gamma, beta, stride=stride, padding=padding)

    # Default (fused single-call) path.
    fwd_fused = jax.jit(functools.partial(cnn_block_forward, stride=stride, padding=padding))
    out_fused = jax.block_until_ready(fwd_fused(x, weight, gamma, beta))
    assert out_fused.shape == (N, C_out, H, W)
    # bf16 MXU inputs (f32 accumulation) -> slightly looser tolerance than pure f32.
    assert jnp.allclose(out_fused, ref, atol=2e-2, rtol=2e-2), \
        float(jnp.max(jnp.abs(out_fused - ref)))

    # Also exercise the two-pass fallback (bf16 inter-pass, "parallel" grids).
    fwd_2p = jax.jit(functools.partial(cnn_block_forward, stride=stride, padding=padding,
                                       force_two_pass=True))
    out_2p = jax.block_until_ready(fwd_2p(x, weight, gamma, beta))
    assert out_2p.shape == (N, C_out, H, W)
    assert jnp.allclose(out_2p, ref, atol=3e-2, rtol=3e-2), \
        float(jnp.max(jnp.abs(out_2p - ref)))

    print("KERNEL_OK")
</pallas_src>

<mosaic_0001>
module attributes {stable_mosaic.version = 11 : i64} {
  func.func @_fused_kernel(%arg0: i32, %arg1: i32, %arg2: memref<1x4x342xbf16, #tpu.memory_space<vmem>>, %arg3: memref<8x36xbf16, #tpu.memory_space<vmem>>, %arg4: memref<1x288xf32, #tpu.memory_space<vmem>>, %arg5: memref<8x1xf32, #tpu.memory_space<vmem>>, %arg6: memref<8x1xf32, #tpu.memory_space<vmem>>, %arg7: memref<1x8x256xf32, #tpu.memory_space<vmem>>, %arg8: memref<36x288xbf16, #tpu.memory_space<vmem>>, %arg9: memref<2x8x288xf32, #tpu.memory_space<vmem>>, %arg10: memref<8x1xf32, #tpu.memory_space<vmem>>, %arg11: memref<8x1xf32, #tpu.memory_space<vmem>>, %arg12: memref<8x1xf32, #tpu.memory_space<vmem>>, %arg13: memref<8x1xf32, #tpu.memory_space<vmem>>) attributes {dimension_semantics = [#tpu.dimension_semantics<arbitrary>, #tpu.dimension_semantics<arbitrary>], iteration_bounds = array<i64: 2, 2>, scalar_prefetch = 0 : i64, scratch_operands = 6 : i64, tpu.core_type = #tpu.core_type<tc>, window_params = [{transform_indices = @transform_0, window_bounds = array<i64: 1, 4, 342>}, {pipeline_mode = #tpu.pipeline_mode<synchronous>, transform_indices = @transform_1, window_bounds = array<i64: 8, 36>}, {pipeline_mode = #tpu.pipeline_mode<synchronous>, transform_indices = @transform_2, window_bounds = array<i64: 1, 288>}, {pipeline_mode = #tpu.pipeline_mode<synchronous>, transform_indices = @transform_3, window_bounds = array<i64: 8, 1>}, {pipeline_mode = #tpu.pipeline_mode<synchronous>, transform_indices = @transform_4, window_bounds = array<i64: 8, 1>}, {transform_indices = @transform_5, window_bounds = array<i64: 1, 8, 256>}]} {
    %c0_i32 = arith.constant 0 : i32
    %0 = arith.cmpi eq, %arg0, %c0_i32 : i32
    %1 = arith.extui %0 : i1 to i32
    %c0_i32_0 = arith.constant 0 : i32
    %2 = arith.cmpi ne, %1, %c0_i32_0 : i32
    scf.if %2 {
      %c0 = arith.constant 0 : index
      %c0_2 = arith.constant 0 : index
      %c0_3 = arith.constant 0 : index
      %6 = vector.load %arg2[%c0, %c0_2, %c0_3] : memref<1x4x342xbf16, #tpu.memory_space<vmem>>, vector<1x4x342xbf16>
      %7 = vector.shape_cast %6 : vector<1x4x342xbf16> to vector<4x342xbf16>
      %8 = vector.extract_strided_slice %7 {offsets = [0, 0], sizes = [4, 288], strides = [1, 1]} : vector<4x342xbf16> to vector<4x288xbf16>
      %c0_4 = arith.constant 0 : index
      %c0_5 = arith.constant 0 : index
      %9 = vector.load %arg8[%c0_4, %c0_5] : memref<36x288xbf16, #tpu.memory_space<vmem>>, vector<4x288xbf16>
      tpu.vector_store %arg8[%c0_4, %c0_5], %8 {strides = array<i32>} : memref<36x288xbf16, #tpu.memory_space<vmem>>, vector<4x288xbf16>,
      %10 = vector.extract_strided_slice %7 {offsets = [0, 1], sizes = [4, 288], strides = [1, 1]} : vector<4x342xbf16> to vector<4x288xbf16>
      %c4 = arith.constant 4 : index
      %c0_6 = arith.constant 0 : index
      %11 = vector.load %arg8[%c4, %c0_6] : memref<36x288xbf16, #tpu.memory_space<vmem>>, vector<4x288xbf16>
      tpu.vector_store %arg8[%c4, %c0_6], %10 {strides = array<i32>} : memref<36x288xbf16, #tpu.memory_space<vmem>>, vector<4x288xbf16>,
      %12 = vector.extract_strided_slice %7 {offsets = [0, 2], sizes = [4, 288], strides = [1, 1]} : vector<4x342xbf16> to vector<4x288xbf16>
      %c8 = arith.constant 8 : index
      %c0_7 = arith.constant 0 : index
      %13 = vector.load %arg8[%c8, %c0_7] : memref<36x288xbf16, #tpu.memory_space<vmem>>, vector<4x288xbf16>
      tpu.vector_store %arg8[%c8, %c0_7], %12 {strides = array<i32>} : memref<36x288xbf16, #tpu.memory_space<vmem>>, vector<4x288xbf16>,
      %14 = vector.extract_strided_slice %7 {offsets = [0, 18], sizes = [4, 288], strides = [1, 1]} : vector<4x342xbf16> to vector<4x288xbf16>
      %c12 = arith.constant 12 : index
      %c0_8 = arith.constant 0 : index
      %15 = vector.load %arg8[%c12, %c0_8] : memref<36x288xbf16, #tpu.memory_space<vmem>>, vector<4x288xbf16>
      tpu.vector_store %arg8[%c12, %c0_8], %14 {strides = array<i32>} : memref<36x288xbf16, #tpu.memory_space<vmem>>, vector<4x288xbf16>,
      %16 = vector.extract_strided_slice %7 {offsets = [0, 19], sizes = [4, 288], strides = [1, 1]} : vector<4x342xbf16> to vector<4x288xbf16>
      %c16 = arith.constant 16 : index
      %c0_9 = arith.constant 0 : index
      %17 = vector.load %arg8[%c16, %c0_9] : memref<36x288xbf16, #tpu.memory_space<vmem>>, vector<4x288xbf16>
      tpu.vector_store %arg8[%c16, %c0_9], %16 {strides = array<i32>} : memref<36x288xbf16, #tpu.memory_space<vmem>>, vector<4x288xbf16>,
      %18 = vector.extract_strided_slice %7 {offsets = [0, 20], sizes = [4, 288], strides = [1, 1]} : vector<4x342xbf16> to vector<4x288xbf16>
      %c20 = arith.constant 20 : index
      %c0_10 = arith.constant 0 : index
      %19 = vector.load %arg8[%c20, %c0_10] : memref<36x288xbf16, #tpu.memory_space<vmem>>, vector<4x288xbf16>
      tpu.vector_store %arg8[%c20, %c0_10], %18 {strides = array<i32>} : memref<36x288xbf16, #tpu.memory_space<vmem>>, vector<4x288xbf16>,
      %20 = vector.extract_strided_slice %7 {offsets = [0, 36], sizes = [4, 288], strides = [1, 1]} : vector<4x342xbf16> to vector<4x288xbf16>
      %c24 = arith.constant 24 : index
      %c0_11 = arith.constant 0 : index
      %21 = vector.load %arg8[%c24, %c0_11] : memref<36x288xbf16, #tpu.memory_space<vmem>>, vector<4x288xbf16>
      tpu.vector_store %arg8[%c24, %c0_11], %20 {strides = array<i32>} : memref<36x288xbf16, #tpu.memory_space<vmem>>, vector<4x288xbf16>,
      %22 = vector.extract_strided_slice %7 {offsets = [0, 37], sizes = [4, 288], strides = [1, 1]} : vector<4x342xbf16> to vector<4x288xbf16>
      %c28 = arith.constant 28 : index
      %c0_12 = arith.constant 0 : index
      %23 = vector.load %arg8[%c28, %c0_12] : memref<36x288xbf16, #tpu.memory_space<vmem>>, vector<4x288xbf16>
      tpu.vector_store %arg8[%c28, %c0_12], %22 {strides = array<i32>} : memref<36x288xbf16, #tpu.memory_space<vmem>>, vector<4x288xbf16>,
      %24 = vector.extract_strided_slice %7 {offsets = [0, 38], sizes = [4, 288], strides = [1, 1]} : vector<4x342xbf16> to vector<4x288xbf16>
      %c32 = arith.constant 32 : index
      %c0_13 = arith.constant 0 : index
      %25 = vector.load %arg8[%c32, %c0_13] : memref<36x288xbf16, #tpu.memory_space<vmem>>, vector<4x288xbf16>
      tpu.vector_store %arg8[%c32, %c0_13], %24 {strides = array<i32>} : memref<36x288xbf16, #tpu.memory_space<vmem>>, vector<4x288xbf16>,
      %c0_14 = arith.constant 0 : index
      %c0_15 = arith.constant 0 : index
      %26 = vector.load %arg3[%c0_14, %c0_15] : memref<8x36xbf16, #tpu.memory_space<vmem>>, vector<8x36xbf16>
      %c0_16 = arith.constant 0 : index
      %c0_17 = arith.constant 0 : index
      %27 = vector.load %arg8[%c0_16, %c0_17] : memref<36x288xbf16, #tpu.memory_space<vmem>>, vector<36x288xbf16>
      %cst = arith.constant dense<0.000000e+00> : vector<8x288xf32>
      %28 = tpu.matmul %26, %27, %cst {dimension_numbers = #tpu.dot_dimension_numbers<[1], [0], [0], [1], [0, 0, 1, 1], [], []>} : vector<8x36xbf16>, vector<36x288xbf16>, vector<8x288xf32> -> vector<8x288xf32>
      %29 = arith.index_cast %arg1 : i32 to index
      %c0_18 = arith.constant 0 : index
      %c0_19 = arith.constant 0 : index
      %30 = vector.load %arg9[%29, %c0_18, %c0_19] : memref<2x8x288xf32, #tpu.memory_space<vmem>>, vector<1x8x288xf32>
      %31 = vector.shape_cast %30 : vector<1x8x288xf32> to vector<8x288xf32>
      %32 = vector.shape_cast %28 : vector<8x288xf32> to vector<1x8x288xf32>
      tpu.vector_store %arg9[%29, %c0_18, %c0_19], %32 {strides = array<i32>} : memref<2x8x288xf32, #tpu.memory_space<vmem>>, vector<1x8x288xf32>,
      %c0_i32_20 = arith.constant 0 : i32
      %33 = arith.cmpi eq, %arg1, %c0_i32_20 : i32
      %34 = arith.extui %33 : i1 to i32
      %c0_i32_21 = arith.constant 0 : i32
      %35 = arith.cmpi ne, %34, %c0_i32_21 : i32
      scf.if %35 {
        %cst_34 = arith.constant 0.000000e+00 : f32
        %50 = vector.broadcast %cst_34 : f32 to vector<8x1xf32>
        %c0_35 = arith.constant 0 : index
        %c0_36 = arith.constant 0 : index
        %51 = vector.load %arg10[%c0_35, %c0_36] : memref<8x1xf32, #tpu.memory_space<vmem>>, vector<8x1xf32>
        tpu.vector_store %arg10[%c0_35, %c0_36], %50 {strides = array<i32>} : memref<8x1xf32, #tpu.memory_space<vmem>>, vector<8x1xf32>,
        %cst_37 = arith.constant 0.000000e+00 : f32
        %52 = vector.broadcast %cst_37 : f32 to vector<8x1xf32>
        %c0_38 = arith.constant 0 : index
        %c0_39 = arith.constant 0 : index
        %53 = vector.load %arg11[%c0_38, %c0_39] : memref<8x1xf32, #tpu.memory_space<vmem>>, vector<8x1xf32>
        tpu.vector_store %arg11[%c0_38, %c0_39], %52 {strides = array<i32>} : memref<8x1xf32, #tpu.memory_space<vmem>>, vector<8x1xf32>,
      } else {
      }
      %c0_22 = arith.constant 0 : index
      %c0_23 = arith.constant 0 : index
      %36 = vector.load %arg4[%c0_22, %c0_23] : memref<1x288xf32, #tpu.memory_space<vmem>>, vector<1x288xf32>
      %37 = vector.broadcast %36 : vector<1x288xf32> to vector<8x288xf32>
      %38 = arith.mulf %28, %37 : vector<8x288xf32>
      %c0_24 = arith.constant 0 : index
      %c0_25 = arith.constant 0 : index
      %39 = vector.load %arg10[%c0_24, %c0_25] : memref<8x1xf32, #tpu.memory_space<vmem>>, vector<8x1xf32>
      %cst_26 = arith.constant dense<0.000000e+00> : vector<8xf32>
      %40 = vector.multi_reduction <add>, %38, %cst_26 [1] : vector<8x288xf32> to vector<8xf32>
      %41 = vector.shape_cast %40 : vector<8xf32> to vector<8x1xf32>
      %42 = arith.addf %39, %41 : vector<8x1xf32>
      %c0_27 = arith.constant 0 : index
      %c0_28 = arith.constant 0 : index
      %43 = vector.load %arg10[%c0_27, %c0_28] : memref<8x1xf32, #tpu.memory_space<vmem>>, vector<8x1xf32>
      tpu.vector_store %arg10[%c0_27, %c0_28], %42 {strides = array<i32>} : memref<8x1xf32, #tpu.memory_space<vmem>>, vector<8x1xf32>,
      %c0_29 = arith.constant 0 : index
      %c0_30 = arith.constant 0 : index
      %44 = vector.load %arg11[%c0_29, %c0_30] : memref<8x1xf32, #tpu.memory_space<vmem>>, vector<8x1xf32>
      %45 = arith.mulf %38, %38 : vector<8x288xf32>
      %cst_31 = arith.constant dense<0.000000e+00> : vector<8xf32>
      %46 = vector.multi_reduction <add>, %45, %cst_31 [1] : vector<8x288xf32> to vector<8xf32>
      %47 = vector.shape_cast %46 : vector<8xf32> to vector<8x1xf32>
      %48 = arith.addf %44, %47 : vector<8x1xf32>
      %c0_32 = arith.constant 0 : index
      %c0_33 = arith.constant 0 : index
      %49 = vector.load %arg11[%c0_32, %c0_33] : memref<8x1xf32, #tpu.memory_space<vmem>>, vector<8x1xf32>
      tpu.vector_store %arg11[%c0_32, %c0_33], %48 {strides = array<i32>} : memref<8x1xf32, #tpu.memory_space<vmem>>, vector<8x1xf32>,
    } else {
    }
    %c1_i32 = arith.constant 1 : i32
    %3 = arith.cmpi eq, %arg0, %c1_i32 : i32
    %4 = arith.extui %3 : i1 to i32
    %c0_i32_1 = arith.constant 0 : i32
    %5 = arith.cmpi ne, %4, %c0_i32_1 : i32
    scf.if %5 {
      %c0_i32_2 = arith.constant 0 : i32
      %6 = arith.cmpi eq, %arg1, %c0_i32_2 : i32
      %7 = arith.extui %6 : i1 to i32
      %c0_i32_3 = arith.constant 0 : i32
      %8 = arith.cmpi ne, %7, %c0_i32_3 : i32
      scf.if %8 {
        %c0_43 = arith.constant 0 : index
        %c0_44 = arith.constant 0 : index
        %87 = vector.load %arg10[%c0_43, %c0_44] : memref<8x1xf32, #tpu.memory_space<vmem>>, vector<8x1xf32>
        %cst_45 = arith.constant 0.001953125 : f32
        %88 = vector.broadcast %cst_45 : f32 to vector<8x1xf32>
        %89 = arith.mulf %87, %88 : vector<8x1xf32>
        %c0_46 = arith.constant 0 : index
        %c0_47 = arith.constant 0 : index
        %90 = vector.load %arg11[%c0_46, %c0_47] : memref<8x1xf32, #tpu.memory_space<vmem>>, vector<8x1xf32>
        %cst_48 = arith.constant 0.001953125 : f32
        %91 = vector.broadcast %cst_48 : f32 to vector<8x1xf32>
        %92 = arith.mulf %90, %91 : vector<8x1xf32>
        %93 = arith.mulf %89, %89 : vector<8x1xf32>
        %94 = arith.subf %92, %93 : vector<8x1xf32>
        %cst_49 = arith.constant 9.99999974E-6 : f32
        %95 = vector.broadcast %cst_49 : f32 to vector<8x1xf32>
        %96 = arith.addf %94, %95 : vector<8x1xf32>
        %97 = math.rsqrt %96 : vector<8x1xf32>
        %c0_50 = arith.constant 0 : index
        %c0_51 = arith.constant 0 : index
        %98 = vector.load %arg5[%c0_50, %c0_51] : memref<8x1xf32, #tpu.memory_space<vmem>>, vector<8x1xf32>
        %99 = arith.mulf %98, %97 : vector<8x1xf32>
        %c0_52 = arith.constant 0 : index
        %c0_53 = arith.constant 0 : index
        %100 = vector.load %arg12[%c0_52, %c0_53] : memref<8x1xf32, #tpu.memory_space<vmem>>, vector<8x1xf32>
        tpu.vector_store %arg12[%c0_52, %c0_53], %99 {strides = array<i32>} : memref<8x1xf32, #tpu.memory_space<vmem>>, vector<8x1xf32>,
        %c0_54 = arith.constant 0 : index
        %c0_55 = arith.constant 0 : index
        %101 = vector.load %arg6[%c0_54, %c0_55] : memref<8x1xf32, #tpu.memory_space<vmem>>, vector<8x1xf32>
        %c0_56 = arith.constant 0 : index
        %c0_57 = arith.constant 0 : index
        %102 = vector.load %arg5[%c0_56, %c0_57] : memref<8x1xf32, #tpu.memory_space<vmem>>, vector<8x1xf32>
        %103 = arith.mulf %89, %102 : vector<8x1xf32>
        %104 = arith.mulf %103, %97 : vector<8x1xf32>
        %105 = arith.subf %101, %104 : vector<8x1xf32>
        %c0_58 = arith.constant 0 : index
        %c0_59 = arith.constant 0 : index
        %106 = vector.load %arg13[%c0_58, %c0_59] : memref<8x1xf32, #tpu.memory_space<vmem>>, vector<8x1xf32>
        tpu.vector_store %arg13[%c0_58, %c0_59], %105 {strides = array<i32>} : memref<8x1xf32, #tpu.memory_space<vmem>>, vector<8x1xf32>,
      } else {
      }
      %9 = arith.index_cast %arg1 : i32 to index
      %c0 = arith.constant 0 : index
      %c0_4 = arith.constant 0 : index
      %10 = vector.load %arg9[%9, %c0, %c0_4] : memref<2x8x288xf32, #tpu.memory_space<vmem>>, vector<1x8x288xf32>
      %11 = vector.shape_cast %10 : vector<1x8x288xf32> to vector<8x288xf32>
      %c0_5 = arith.constant 0 : index
      %c0_6 = arith.constant 0 : index
      %12 = vector.load %arg12[%c0_5, %c0_6] : memref<8x1xf32, #tpu.memory_space<vmem>>, vector<8x1xf32>
      %13 = vector.broadcast %12 : vector<8x1xf32> to vector<8x288xf32>
      %14 = arith.mulf %11, %13 : vector<8x288xf32>
      %c0_7 = arith.constant 0 : index
      %c0_8 = arith.constant 0 : index
      %15 = vector.load %arg13[%c0_7, %c0_8] : memref<8x1xf32, #tpu.memory_space<vmem>>, vector<8x1xf32>
      %16 = vector.broadcast %15 : vector<8x1xf32> to vector<8x288xf32>
      %17 = arith.addf %14, %16 : vector<8x288xf32>
      %cst = arith.constant 0.000000e+00 : f32
      %18 = vector.broadcast %cst : f32 to vector<8x288xf32>
      %19 = arith.cmpf ogt, %17, %18 : vector<8x288xf32>
      %cst_9 = arith.constant 1.000000e-01 : f32
      %20 = vector.broadcast %cst_9 : f32 to vector<8x288xf32>
      %21 = arith.mulf %20, %17 : vector<8x288xf32>
      %22 = arith.select %19, %17, %21 : vector<8x288xi1>, vector<8x288xf32>
      %23 = vector.extract_strided_slice %22 {offsets = [0, 0], sizes = [8, 16], strides = [1, 1]} : vector<8x288xf32> to vector<8x16xf32>
      %c0_10 = arith.constant 0 : index
      %c0_11 = arith.constant 0 : index
      %c0_12 = arith.constant 0 : index
      %24 = vector.load %arg7[%c0_10, %c0_11, %c0_12] : memref<1x8x256xf32, #tpu.memory_space<vmem>>, vector<1x8x16xf32>
      %25 = vector.shape_cast %24 : vector<1x8x16xf32> to vector<8x16xf32>
      %26 = vector.shape_cast %23 : vector<8x16xf32> to vector<1x8x16xf32>
      tpu.vector_store %arg7[%c0_10, %c0_11, %c0_12], %26 {strides = array<i32>} : memref<1x8x256xf32, #tpu.memory_space<vmem>>, vector<1x8x16xf32>,
      %27 = vector.extract_strided_slice %22 {offsets = [0, 18], sizes = [8, 16], strides = [1, 1]} : vector<8x288xf32> to vector<8x16xf32>
      %c0_13 = arith.constant 0 : index
      %c0_14 = arith.constant 0 : index
      %c16 = arith.constant 16 : index
      %28 = vector.load %arg7[%c0_13, %c0_14, %c16] : memref<1x8x256xf32, #tpu.memory_space<vmem>>, vector<1x8x16xf32>
      %29 = vector.shape_cast %28 : vector<1x8x16xf32> to vector<8x16xf32>
      %30 = vector.shape_cast %27 : vector<8x16xf32> to vector<1x8x16xf32>
      tpu.vector_store %arg7[%c0_13, %c0_14, %c16], %30 {strides = array<i32>} : memref<1x8x256xf32, #tpu.memory_space<vmem>>, vector<1x8x16xf32>,
      %31 = vector.extract_strided_slice %22 {offsets = [0, 36], sizes = [8, 16], strides = [1, 1]} : vector<8x288xf32> to vector<8x16xf32>
      %c0_15 = arith.constant 0 : index
      %c0_16 = arith.constant 0 : index
      %c32 = arith.constant 32 : index
      %32 = vector.load %arg7[%c0_15, %c0_16, %c32] : memref<1x8x256xf32, #tpu.memory_space<vmem>>, vector<1x8x16xf32>
      %33 = vector.shape_cast %32 : vector<1x8x16xf32> to vector<8x16xf32>
      %34 = vector.shape_cast %31 : vector<8x16xf32> to vector<1x8x16xf32>
      tpu.vector_store %arg7[%c0_15, %c0_16, %c32], %34 {strides = array<i32>} : memref<1x8x256xf32, #tpu.memory_space<vmem>>, vector<1x8x16xf32>,
      %35 = vector.extract_strided_slice %22 {offsets = [0, 54], sizes = [8, 16], strides = [1, 1]} : vector<8x288xf32> to vector<8x16xf32>
      %c0_17 = arith.constant 0 : index
      %c0_18 = arith.constant 0 : index
      %c48 = arith.constant 48 : index
      %36 = vector.load %arg7[%c0_17, %c0_18, %c48] : memref<1x8x256xf32, #tpu.memory_space<vmem>>, vector<1x8x16xf32>
      %37 = vector.shape_cast %36 : vector<1x8x16xf32> to vector<8x16xf32>
      %38 = vector.shape_cast %35 : vector<8x16xf32> to vector<1x8x16xf32>
      tpu.vector_store %arg7[%c0_17, %c0_18, %c48], %38 {strides = array<i32>} : memref<1x8x256xf32, #tpu.memory_space<vmem>>, vector<1x8x16xf32>,
      %39 = vector.extract_strided_slice %22 {offsets = [0, 72], sizes = [8, 16], strides = [1, 1]} : vector<8x288xf32> to vector<8x16xf32>
      %c0_19 = arith.constant 0 : index
      %c0_20 = arith.constant 0 : index
      %c64 = arith.constant 64 : index
      %40 = vector.load %arg7[%c0_19, %c0_20, %c64] : memref<1x8x256xf32, #tpu.memory_space<vmem>>, vector<1x8x16xf32>
      %41 = vector.shape_cast %40 : vector<1x8x16xf32> to vector<8x16xf32>
      %42 = vector.shape_cast %39 : vector<8x16xf32> to vector<1x8x16xf32>
      tpu.vector_store %arg7[%c0_19, %c0_20, %c64], %42 {strides = array<i32>} : memref<1x8x256xf32, #tpu.memory_space<vmem>>, vector<1x8x16xf32>,
      %43 = vector.extract_strided_slice %22 {offsets = [0, 90], sizes = [8, 16], strides = [1, 1]} : vector<8x288xf32> to vector<8x16xf32>
      %c0_21 = arith.constant 0 : index
      %c0_22 = arith.constant 0 : index
      %c80 = arith.constant 80 : index
      %44 = vector.load %arg7[%c0_21, %c0_22, %c80] : memref<1x8x256xf32, #tpu.memory_space<vmem>>, vector<1x8x16xf32>
      %45 = vector.shape_cast %44 : vector<1x8x16xf32> to vector<8x16xf32>
      %46 = vector.shape_cast %43 : vector<8x16xf32> to vector<1x8x16xf32>
      tpu.vector_store %arg7[%c0_21, %c0_22, %c80], %46 {strides = array<i32>} : memref<1x8x256xf32, #tpu.memory_space<vmem>>, vector<1x8x16xf32>,
      %47 = vector.extract_strided_slice %22 {offsets = [0, 108], sizes = [8, 16], strides = [1, 1]} : vector<8x288xf32> to vector<8x16xf32>
      %c0_23 = arith.constant 0 : index
      %c0_24 = arith.constant 0 : index
      %c96 = arith.constant 96 : index
      %48 = vector.load %arg7[%c0_23, %c0_24, %c96] : memref<1x8x256xf32, #tpu.memory_space<vmem>>, vector<1x8x16xf32>
      %49 = vector.shape_cast %48 : vector<1x8x16xf32> to vector<8x16xf32>
      %50 = vector.shape_cast %47 : vector<8x16xf32> to vector<1x8x16xf32>
      tpu.vector_store %arg7[%c0_23, %c0_24, %c96], %50 {strides = array<i32>} : memref<1x8x256xf32, #tpu.memory_space<vmem>>, vector<1x8x16xf32>,
      %51 = vector.extract_strided_slice %22 {offsets = [0, 126], sizes = [8, 16], strides = [1, 1]} : vector<8x288xf32> to vector<8x16xf32>
      %c0_25 = arith.constant 0 : index
      %c0_26 = arith.constant 0 : index
      %c112 = arith.constant 112 : index
      %52 = vector.load %arg7[%c0_25, %c0_26, %c112] : memref<1x8x256xf32, #tpu.memory_space<vmem>>, vector<1x8x16xf32>
      %53 = vector.shape_cast %52 : vector<1x8x16xf32> to vector<8x16xf32>
      %54 = vector.shape_cast %51 : vector<8x16xf32> to vector<1x8x16xf32>
      tpu.vector_store %arg7[%c0_25, %c0_26, %c112], %54 {strides = array<i32>} : memref<1x8x256xf32, #tpu.memory_space<vmem>>, vector<1x8x16xf32>,
      %55 = vector.extract_strided_slice %22 {offsets = [0, 144], sizes = [8, 16], strides = [1, 1]} : vector<8x288xf32> to vector<8x16xf32>
      %c0_27 = arith.constant 0 : index
      %c0_28 = arith.constant 0 : index
      %c128 = arith.constant 128 : index
      %56 = vector.load %arg7[%c0_27, %c0_28, %c128] : memref<1x8x256xf32, #tpu.memory_space<vmem>>, vector<1x8x16xf32>
      %57 = vector.shape_cast %56 : vector<1x8x16xf32> to vector<8x16xf32>
      %58 = vector.shape_cast %55 : vector<8x16xf32> to vector<1x8x16xf32>
      tpu.vector_store %arg7[%c0_27, %c0_28, %c128], %58 {strides = array<i32>} : memref<1x8x256xf32, #tpu.memory_space<vmem>>, vector<1x8x16xf32>,
      %59 = vector.extract_strided_slice %22 {offsets = [0, 162], sizes = [8, 16], strides = [1, 1]} : vector<8x288xf32> to vector<8x16xf32>
      %c0_29 = arith.constant 0 : index
      %c0_30 = arith.constant 0 : index
      %c144 = arith.constant 144 : index
      %60 = vector.load %arg7[%c0_29, %c0_30, %c144] : memref<1x8x256xf32, #tpu.memory_space<vmem>>, vector<1x8x16xf32>
      %61 = vector.shape_cast %60 : vector<1x8x16xf32> to vector<8x16xf32>
      %62 = vector.shape_cast %59 : vector<8x16xf32> to vector<1x8x16xf32>
      tpu.vector_store %arg7[%c0_29, %c0_30, %c144], %62 {strides = array<i32>} : memref<1x8x256xf32, #tpu.memory_space<vmem>>, vector<1x8x16xf32>,
      %63 = vector.extract_strided_slice %22 {offsets = [0, 180], sizes = [8, 16], strides = [1, 1]} : vector<8x288xf32> to vector<8x16xf32>
      %c0_31 = arith.constant 0 : index
      %c0_32 = arith.constant 0 : index
      %c160 = arith.constant 160 : index
      %64 = vector.load %arg7[%c0_31, %c0_32, %c160] : memref<1x8x256xf32, #tpu.memory_space<vmem>>, vector<1x8x16xf32>
      %65 = vector.shape_cast %64 : vector<1x8x16xf32> to vector<8x16xf32>
      %66 = vector.shape_cast %63 : vector<8x16xf32> to vector<1x8x16xf32>
      tpu.vector_store %arg7[%c0_31, %c0_32, %c160], %66 {strides = array<i32>} : memref<1x8x256xf32, #tpu.memory_space<vmem>>, vector<1x8x16xf32>,
      %67 = vector.extract_strided_slice %22 {offsets = [0, 198], sizes = [8, 16], strides = [1, 1]} : vector<8x288xf32> to vector<8x16xf32>
      %c0_33 = arith.constant 0 : index
      %c0_34 = arith.constant 0 : index
      %c176 = arith.constant 176 : index
      %68 = vector.load %arg7[%c0_33, %c0_34, %c176] : memref<1x8x256xf32, #tpu.memory_space<vmem>>, vector<1x8x16xf32>
      %69 = vector.shape_cast %68 : vector<1x8x16xf32> to vector<8x16xf32>
      %70 = vector.shape_cast %67 : vector<8x16xf32> to vector<1x8x16xf32>
      tpu.vector_store %arg7[%c0_33, %c0_34, %c176], %70 {strides = array<i32>} : memref<1x8x256xf32, #tpu.memory_space<vmem>>, vector<1x8x16xf32>,
      %71 = vector.extract_strided_slice %22 {offsets = [0, 216], sizes = [8, 16], strides = [1, 1]} : vector<8x288xf32> to vector<8x16xf32>
      %c0_35 = arith.constant 0 : index
      %c0_36 = arith.constant 0 : index
      %c192 = arith.constant 192 : index
      %72 = vector.load %arg7[%c0_35, %c0_36, %c192] : memref<1x8x256xf32, #tpu.memory_space<vmem>>, vector<1x8x16xf32>
      %73 = vector.shape_cast %72 : vector<1x8x16xf32> to vector<8x16xf32>
      %74 = vector.shape_cast %71 : vector<8x16xf32> to vector<1x8x16xf32>
      tpu.vector_store %arg7[%c0_35, %c0_36, %c192], %74 {strides = array<i32>} : memref<1x8x256xf32, #tpu.memory_space<vmem>>, vector<1x8x16xf32>,
      %75 = vector.extract_strided_slice %22 {offsets = [0, 234], sizes = [8, 16], strides = [1, 1]} : vector<8x288xf32> to vector<8x16xf32>
      %c0_37 = arith.constant 0 : index
      %c0_38 = arith.constant 0 : index
      %c208 = arith.constant 208 : index
      %76 = vector.load %arg7[%c0_37, %c0_38, %c208] : memref<1x8x256xf32, #tpu.memory_space<vmem>>, vector<1x8x16xf32>
      %77 = vector.shape_cast %76 : vector<1x8x16xf32> to vector<8x16xf32>
      %78 = vector.shape_cast %75 : vector<8x16xf32> to vector<1x8x16xf32>
      tpu.vector_store %arg7[%c0_37, %c0_38, %c208], %78 {strides = array<i32>} : memref<1x8x256xf32, #tpu.memory_space<vmem>>, vector<1x8x16xf32>,
      %79 = vector.extract_strided_slice %22 {offsets = [0, 252], sizes = [8, 16], strides = [1, 1]} : vector<8x288xf32> to vector<8x16xf32>
      %c0_39 = arith.constant 0 : index
      %c0_40 = arith.constant 0 : index
      %c224 = arith.constant 224 : index
      %80 = vector.load %arg7[%c0_39, %c0_40, %c224] : memref<1x8x256xf32, #tpu.memory_space<vmem>>, vector<1x8x16xf32>
      %81 = vector.shape_cast %80 : vector<1x8x16xf32> to vector<8x16xf32>
      %82 = vector.shape_cast %79 : vector<8x16xf32> to vector<1x8x16xf32>
      tpu.vector_store %arg7[%c0_39, %c0_40, %c224], %82 {strides = array<i32>} : memref<1x8x256xf32, #tpu.memory_space<vmem>>, vector<1x8x16xf32>,
      %83 = vector.extract_strided_slice %22 {offsets = [0, 270], sizes = [8, 16], strides = [1, 1]} : vector<8x288xf32> to vector<8x16xf32>
      %c0_41 = arith.constant 0 : index
      %c0_42 = arith.constant 0 : index
      %c240 = arith.constant 240 : index
      %84 = vector.load %arg7[%c0_41, %c0_42, %c240] : memref<1x8x256xf32, #tpu.memory_space<vmem>>, vector<1x8x16xf32>
      %85 = vector.shape_cast %84 : vector<1x8x16xf32> to vector<8x16xf32>
      %86 = vector.shape_cast %83 : vector<8x16xf32> to vector<1x8x16xf32>
      tpu.vector_store %arg7[%c0_41, %c0_42, %c240], %86 {strides = array<i32>} : memref<1x8x256xf32, #tpu.memory_space<vmem>>, vector<1x8x16xf32>,
    } else {
    }
    return
  }
  func.func @transform_0(%arg0: i32, %arg1: i32) -> (i32, i32, i32) {
    %c1_i32 = arith.constant 1 : i32
    %0 = arith.subi %c1_i32, %arg0 : i32
    %1 = arith.muli %0, %arg1 : i32
    %c1_i32_0 = arith.constant 1 : i32
    %2 = arith.muli %arg0, %c1_i32_0 : i32
    %3 = arith.addi %1, %2 : i32
    %c0_i32 = arith.constant 0 : i32
    %c0_i32_1 = arith.constant 0 : i32
    %c0_i32_2 = arith.constant 0 : i32
    return %3, %c0_i32, %c0_i32_1 : i32, i32, i32
  }
  func.func @transform_1(%arg0: i32, %arg1: i32) -> (i32, i32) {
    %c0_i32 = arith.constant 0 : i32
    %c0_i32_0 = arith.constant 0 : i32
    %c0_i32_1 = arith.constant 0 : i32
    return %c0_i32, %c0_i32_0 : i32, i32
  }
  func.func @transform_2(%arg0: i32, %arg1: i32) -> (i32, i32) {
    %c0_i32 = arith.constant 0 : i32
    %c0_i32_0 = arith.constant 0 : i32
    %c0_i32_1 = arith.constant 0 : i32
    return %c0_i32, %c0_i32_0 : i32, i32
  }
  func.func @transform_3(%arg0: i32, %arg1: i32) -> (i32, i32) {
    %c0_i32 = arith.constant 0 : i32
    %c0_i32_0 = arith.constant 0 : i32
    %c0_i32_1 = arith.constant 0 : i32
    return %c0_i32, %c0_i32_0 : i32, i32
  }
  func.func @transform_4(%arg0: i32, %arg1: i32) -> (i32, i32) {
    %c0_i32 = arith.constant 0 : i32
    %c0_i32_0 = arith.constant 0 : i32
    %c0_i32_1 = arith.constant 0 : i32
    return %c0_i32, %c0_i32_0 : i32, i32
  }
  func.func @transform_5(%arg0: i32, %arg1: i32) -> (i32, i32, i32) {
    %0 = arith.muli %arg0, %arg1 : i32
    %c0_i32 = arith.constant 0 : i32
    %c0_i32_0 = arith.constant 0 : i32
    %c0_i32_1 = arith.constant 0 : i32
    return %0, %c0_i32, %c0_i32_0 : i32, i32, i32
  }
}

</mosaic_0001>

<bundles_post_ra>
// kernel: cnn_block_forward.1
= control target key start
LH: loop header
LB: loop body
LE: loop exit
PB: predicated region body
PF: predicated region fallthrough
CT: control target
= control target key end

     0   :  { %s1045_s18 = smov 0   ;;  %s1047_s19 = smov 0   ;;  %s1176_s0 = inlined_call_operand.vmem [shape: bf16[2,4,342], index: 0, kind: input, shape index: {}]   ;;  %s1177_s1 = inlined_call_operand.vmem [shape: bf16[8,36], index: 1, kind: input, shape index: {}]   ;;  %s1178_s2 = inlined_call_operand.vmem [shape: f32[1,288], index: 2, kind: input, shape index: {}]   ;;  %s1179_s3 = inlined_call_operand.vmem [shape: f32[8,1], index: 3, kind: input, shape index: {}]   ;;  %s1180_s4 = inlined_call_operand.vmem [shape: f32[8,1], index: 4, kind: input, shape index: {}]   ;;  %s1181_s5 = inlined_call_operand.vmem [shape: f32[2,8,256], index: 5, kind: output, shape index: {}]  }
   0x1   :  { %s1049_s20 = smov 0   ;;  %s1051_s21 = smov 0  }
   0x2   :  { %s1053_s22 = smov 0  }
   0x3 LB: > { %s24_s23 = sadd.s32 1, %s976_s20  ;;  %s27_s24 = sadd.s32 1, %s980_s21  ;;  %s984_s22 = sphi %s1053_s22, %s15_s22   ;;  %s980_s21 = sphi %s1051_s21, %s1185_s21   ;;  %s976_s20 = sphi %s1049_s20, %s1184_s20   ;;  %s972_s19 = sphi %s1047_s19, %s1183_s19   ;;  %s968_s18 = sphi %s1045_s18, %s1182_s18  }
   0x4   : > { %p25_p0 = scmp.ge.s32.totalorder %s24_s23, 2  ;;  %p821_p1 = scmp.ge.s32.totalorder %s984_s22, 1 }
   0x5   : > { %p213_p2 = scmp.lt.s32.totalorder %s984_s22, 5 }
   0x6   : > { %s1187_s23 = smov (%p25_p0, %s24_s23), 0  ;;  %s1189_s24 = smov (!%p25_p0, %s27_s24), %s980_s21 }
   0x7   : > { %p214_p3 = pnand %p821_p1, %p213_p2  ;;  %p29_p4 = scmp.ge.s32.totalorder %s1189_s24, 2 }
   0x8   : > { %s245_s25 = ssub.s32 (!%p214_p3), 1, %s972_s19  ;;  %s256_s26 = smul.u32 (!%p214_p3), %s968_s18, %s972_s19 }
   0x9   : > { %s1191_s24 = smov (%p29_p4, %s1189_s24), 0  ;;  %217 = sbr.rel (%p214_p3) target bundleno = 870 (0x366), region = 40 }
   0xa   : > { %s246_s27 = smul.u32 (!%p214_p3), %s968_s18, %s245_s25  ;;  %p257_p5 = scmp.lt.s32.totalorder (!%p214_p3), %s256_s26, 1 }
   0xb   : > { %p825_p7 = scmp.ne.s32.totalorder (!%p214_p3), %s972_s19, 0 }
   0xc   : > { %s247_s28 = sadd.s32 (!%p214_p3), %s972_s19, %s246_s27 }
   0xd   : > { %p248_p6 = scmp.lt.s32.totalorder (!%p214_p3), %s247_s28, 1 }
   0xe   : > { %s1193_s26 = smov (!%p257_p5, %s256_s26), 1  ;;  %267 = sbr.rel (%p825_p7) target bundleno = 543 (0x21f), region = 44 }
   0xf   : > { %s1195_s28 = smov (!%p248_p6, %s247_s28), 1  ;;  %s846_s29 = sshll.u32 %s1193_s26, 4 }
  0x10   : > { %s863_s30 = smul.u32 6, %s1195_s28  ;;  %s1087_s8 = scalar_lea.vmem %s1181_s5, %s846_s29 }
  0x11   : > { %s987_s12 = smov (!%p825_p7), 109   ;;  %s988_s13 = smov (!%p825_p7), 90  }
  0x12   : > { %s252_s11 = scalar_lea.vmem %s1176_s0, %s863_s30  ;;  %s990_s14 = smov (!%p825_p7), 108  }
  0x13   : > { %v268_v0 = vld [vmem:[%s252_s11] sm:$0x3f]  ;;  %v274_v1 = vlaneseq  ;;  %v986_v2 = vmov 1983009808   ;;  %vm288_vm0 = vcmask 254976   ;;  %v989_v11 = vmov 0.0  }
  0x14   : > { %v272_v3 = vunpack.c.l.s4 %v986_v2  ;;  %826 = vst.sshfl [vmem:[#allocation2] sm:$0xf pattern:$0x76325410] %v268_v0  ;;  %v270_v6 = vcombine.high %v268_v0, %v268_v0  ;;  %v290_v10 = vcombine.low %v268_v0, %v268_v0  ;;  %853 = vmatprep.subr.bf16.mxu1 %v989_v11  ;;  %s991_s15 = smov 92   ;;  %s992_s16 = smov 91  }
  0x15   : > { %v1093_v4 = vshrl.u32 %v274_v1, 7  ;;  %s993_s17 = smov 127   ;;  %s994_s25 = smov 126   ;;  %vm995_vm1 = vmmov 0   ;;  %v997_v13 = vmov 0   ;;  %vm304_vm2 = vcmask 1043456  }
  0x16   : > { %v273_v5 = vunpack.c.0.s8 %v272_v3  ;;  %859 = vmatprep.mubr.msk.bf16.mxu1 %vm995_vm1, %v989_v11  ;;  %s996_s26 = smov 110   ;;  %501 = vmatprep.mubr.bf16.mxu0 %v997_v13  ;;  %vm346_vm3 = vcmask 891904   ;;  %vm398_vm4 = vcmask 736256   ;;  %vm311_vm5 = vcmask 257026   ;;  %s847_s29 = smul.u32 24, %s968_s18 }
  0x17   : > { %vm359_vm6 = vcmask 883712   ;;  %vm459_vm7 = vcmask 1041408   ;;  %vm372_vm8 = vcmask 752640   ;;  %vm385_vm9 = vcmask 744448   ;;  %p840_p8 = scmp.ne.s32.totalorder %s968_s18, 0 }
  0x18   : > { %v276_v7 = vsub.s32 %v273_v5, %v1093_v4  ;;  %vm306_vm10 = vcmask 1039360   ;;  %vm320_vm11 = vcmask 1031168   ;;  %vm333_vm12 = vcmask 900096   ;;  %s552_s30 = scalar_lea.vmem [#allocation3], %s847_s29 }
  0x19   : > { %vm455_vm13 = vcmask 293888   ;;  %vm555_vm14 = vcmask 261120  }
  0x1a   : > { %v277_v8 = vrot.slane %v268_v0, %v276_v7  ;;  %v284_v9 = vrot.slane %v270_v6, %v276_v7  ;;  %v297_v12 = vrot.slane %v290_v10, %v276_v7 }
  0x1c   : > { %339 = vrot.lane.b32.xlu1 %v277_v8, %s987_s12  ;;  %391 = vrot.lane.b32.xlu0 %v277_v8, %s988_s13  ;;  %289 = vst.msk [vmem:[#allocation2 + $0x8] sm:$0x3] %vm288_vm0, %v284_v9 }
  0x20   : > { %341 = vrot.lane.b32.xlu1 %v284_v9, %s987_s12  ;;  %393 = vrot.lane.b32.xlu0 %v284_v9, %s988_s13 }
  0x24   : > { %354 = vrot.lane.b32.xlu1 %v277_v8, %s990_s14  ;;  %352 = vrot.lane.b32.xlu0 %v297_v12, %s990_s14 }
  0x28   : > { %367 = vrot.lane.b32.xlu1 %v284_v9, %s991_s15  ;;  %365 = vrot.lane.b32.xlu0 %v277_v8, %s991_s15 }
  0x2c   : > { %380 = vrot.lane.b32.xlu1 %v277_v8, %s992_s16  ;;  %378 = vrot.lane.b32.xlu0 %v297_v12, %s992_s16 }
  0x30   : > { %300 = vrot.lane.b32.xlu1 %v277_v8, %s993_s17  ;;  %298 = vrot.lane.b32.xlu0 %v297_v12, %s993_s17 }
  0x34   : > { %315 = vrot.lane.b32.xlu1 %v284_v9, %s994_s25  ;;  %313 = vrot.lane.b32.xlu0 %v277_v8, %s994_s25  ;;  %v404_v9 = vld [vmem:[%s1177_s1] sm:$0xf] }
  0x38   : > { %328 = vrot.lane.b32.xlu1 %v277_v8, %s996_s26  ;;  %326 = vrot.lane.b32.xlu0 %v297_v12, %s996_s26 }
  0x8e   : > { %v340_v14 = vpop.permute.xlu1 %339  ;;  %v392_v15 = vpop.permute.xlu0 %391 }
  0x8f   : > { %v343_v18 = vrot.slane %v340_v14, 4  ;;  %v395_v19 = vrot.slane %v392_v15, 4 }
  0x92   : > { %v342_v16 = vpop.permute.xlu1 %341  ;;  %v394_v17 = vpop.permute.xlu0 %393 }
  0x93   : > { %v344_v20 = vrot.slane %v342_v16, 4  ;;  %351 = vst.msk [vmem:[#allocation2 + $0x20] sm:$0x3] %vm288_vm0, %v342_v16  ;;  %v396_v21 = vrot.slane %v394_v17, 4  ;;  %403 = vst.msk [vmem:[#allocation2 + $0x38] sm:$0x3] %vm288_vm0, %v394_v17 }
  0x95   : > { %v345_v22 = vsel %vm304_vm2, %v343_v18, %v344_v20  ;;  %v397_v23 = vsel %vm304_vm2, %v395_v19, %v396_v21 }
  0x96   : > { %v347_v24 = vsel %vm346_vm3, %v340_v14, %v345_v22  ;;  %v399_v25 = vsel %vm398_vm4, %v392_v15, %v397_v23  ;;  %v355_v26 = vpop.permute.xlu1 %354  ;;  %v353_v27 = vpop.permute.xlu0 %352 }
  0x97   : > { %350 = vst [vmem:[#allocation2 + $0x18] sm:$0x33] %v347_v24  ;;  %402 = vst [vmem:[#allocation2 + $0x30] sm:$0x33] %v399_v25  ;;  %v357_v28 = vrot.slane %v355_v26, 4  ;;  %v356_v29 = vrot.slane %v353_v27, 4 }
  0x98   : > { %364 = vst.msk [vmem:[#allocation2 + $0x20] sm:$0xc] %vm311_vm5, %v355_v26 }
  0x99   : > { %v358_v30 = vsel %vm304_vm2, %v356_v29, %v357_v28 }
  0x9a   : > { %v360_v31 = vsel %vm359_vm6, %v353_v27, %v358_v30  ;;  %v368_v32 = vpop.permute.xlu1 %367  ;;  %v366_v33 = vpop.permute.xlu0 %365  ;;  %v933_v34 = vld [vmem:[#allocation2 + $0x38] ss:$0 sps:$4 sm:$0x33]  }
  0x9b   : > { %363 = vst [vmem:[#allocation2 + $0x18] sm:$0xcc] %v360_v31  ;;  %v370_v35 = vrot.slane %v368_v32, 4  ;;  %377 = vst.msk [vmem:[#allocation2 + $0x2c] sm:$0x3] %vm288_vm0, %v368_v32  ;;  %v369_v36 = vrot.slane %v366_v33, 4 }
  0x9c   : > { %v467_v37 = vsel %vm459_vm7, %v933_v34, 0 }
  0x9d   : > { %v371_v38 = vsel %vm304_vm2, %v369_v36, %v370_v35  ;;  %854 = vmatpush3.bf16.msra.mxu1 %v467_v37 }
  0x9e   : > { %v373_v39 = vsel %vm372_vm8, %v366_v33, %v371_v38  ;;  %v381_v40 = vpop.permute.xlu1 %380  ;;  %v379_v41 = vpop.permute.xlu0 %378  ;;  %v413_v42 = vld [vmem:[#allocation2 + $0x30] sm:$0x33]  ;;  %855 = vmatprep.subr.bf16.mxu1 %v989_v11 }
  0x9f   : > { %376 = vst [vmem:[#allocation2 + $0x24] sm:$0x33] %v373_v39  ;;  %v383_v43 = vrot.slane %v381_v40, 4  ;;  %390 = vst.msk [vmem:[#allocation2 + $0x2c] sm:$0xc] %vm311_vm5, %v381_v40  ;;  %v382_v44 = vrot.slane %v379_v41, 4  ;;  %v834_v45 = vcombine.high %v413_v42, %v413_v42  ;;  %v833_v46 = vcombine.low %v413_v42, %v413_v42 }
  0xa1   : > { %v384_v47 = vsel %vm304_vm2, %v382_v44, %v383_v43  ;;  %836 = vmatprep.subr.msk.bf16.mxu0 %vm459_vm7, %v834_v45  ;;  %v461_v48 = vsel %vm459_vm7, %v833_v46, 0 }
  0xa2   : > { %v386_v49 = vsel %vm385_vm9, %v379_v41, %v384_v47  ;;  %v301_v50 = vpop.permute.xlu1 %300  ;;  %480 = vmatpush1.bf16.msra.mxu0 %v461_v48  ;;  %v299_v51 = vpop.permute.xlu0 %298 }
  0xa3   : > { %389 = vst [vmem:[#allocation2 + $0x24] sm:$0xcc] %v386_v49  ;;  %v303_v52 = vrot.slane %v301_v50, 4  ;;  %312 = vst.msk [vmem:[#allocation2 + $0x8] sm:$0xc] %vm311_vm5, %v301_v50  ;;  %v302_v53 = vrot.slane %v299_v51, 4 }
  0xa5   : > { %v305_v54 = vsel %vm304_vm2, %v302_v53, %v303_v52 }
  0xa6   : > { %v307_v55 = vsel %vm306_vm10, %v299_v51, %v305_v54  ;;  %v316_v56 = vpop.permute.xlu1 %315  ;;  %v314_v57 = vpop.permute.xlu0 %313  ;;  %v935_v58 = vld [vmem:[#allocation2 + $0x20] ss:$12 sps:$4 sm:$0xff]  }
  0xa7   : > { %310 = vst [vmem:[#allocation2] sm:$0xcc] %v307_v55  ;;  %v318_v59 = vrot.slane %v316_v56, 4  ;;  %325 = vst.msk [vmem:[#allocation2 + $0x14] sm:$0x3] %vm288_vm0, %v316_v56  ;;  %v317_v60 = vrot.slane %v314_v57, 4  ;;  %856 = vmatpush3.bf16.msra.mxu1 %v935_v58 }
  0xa8   : > { %857 = vmatprep.subr.bf16.mxu1 %v989_v11 }
  0xa9   : > { %v319_v61 = vsel %vm304_vm2, %v317_v60, %v318_v59 }
  0xaa   : > { %v321_v62 = vsel %vm320_vm11, %v314_v57, %v319_v61  ;;  %v329_v63 = vpop.permute.xlu1 %328  ;;  %v327_v0 = vpop.permute.xlu0 %326  ;;  %v936_v1 = vld [vmem:[#allocation2 + $0x1c] ss:$12 sps:$4 sm:$0xff]   ;;  %v938_v2 = vld [vmem:[#allocation2 + $0x18] ss:$12 sps:$4 sm:$0xff]  }
  0xab   : > { %324 = vst [vmem:[#allocation2 + $0xc] sm:$0x33] %v321_v62  ;;  %v331_v3 = vrot.slane %v329_v63, 4  ;;  %338 = vst.msk [vmem:[#allocation2 + $0x14] sm:$0xc] %vm311_vm5, %v329_v63  ;;  %v330_v5 = vrot.slane %v327_v0, 4  ;;  %481 = vmatprep.subr.bf16.mxu0 %v936_v1 }
  0xac   : > { %482 = vmatpush1.bf16.msra.mxu0 %v938_v2 }
  0xad   : > { %v332_v6 = vsel %vm304_vm2, %v330_v5, %v331_v3 }
  0xae   : > { %v334_v7 = vsel %vm333_vm12, %v327_v0, %v332_v6 }
  0xaf   : > { %337 = vst [vmem:[#allocation2 + $0xc] sm:$0xcc] %v334_v7 }
  0xb2   : > { %v939_v8 = vld [vmem:[#allocation2 + $0x8] ss:$12 sps:$4 sm:$0xff]  }
  0xb3   : > { %858 = vmatpush3.bf16.msra.mxu1 %v939_v8 }
  0xb6   : > { %v940_v10 = vld [vmem:[#allocation2 + $0x4] ss:$12 sps:$4 sm:$0xff]   ;;  %v942_v11 = vld [vmem:[#allocation2] ss:$12 sps:$4 sm:$0xff]   ;;  %860 = vmatmul.mubr.msk.bf16.vlgmr.msra.gmra.mxu1 %vm455_vm13, %v404_v9 }
  0xb7   : > { %483 = vmatprep.subr.bf16.mxu0 %v940_v10 }
  0xb8   : > { %484 = vmatpush1.bf16.msra.mxu0 %v942_v11 }
  0xbb   : > { %837 = vmatmul.mubr.msk.bf16.vlgmr.msra.gmra.mxu0 %vm455_vm13, %v404_v9 }
 0x176   : > { %v544_v12 = vpop.f32.mrf.mxu1 }
 0x177   : > { %556 = vst.msk [vmem:[%s552_s30 + $0x10] sm:$0xff] %vm555_vm14, %v544_v12 }
 0x178   : > { %v861_v13 = vpop.f32.mrf.mxu1 }
 0x17a   : > { %v547_v14 = vpop.f32.mrf.mxu1 }
 0x17b   : > { %v503_v15 = vpop.f32.mrf.mxu0 }
 0x17c   : > { %553 = vst [vmem:[%s552_s30] sm:$0xff] %v503_v15  ;;  %v862_v16 = vpop.f32.mrf.mxu1 }
 0x17d   : > { %v505_v17 = vpop.f32.mrf.mxu0  ;;  %560 = sbr.rel (%p840_p8) target bundleno = 388 (0x184), region = 48 }
 0x17e   : > { %554 = vst [vmem:[%s552_s30 + $0x8] sm:$0xff] %v505_v17 }
 0x17f   : > { %v507_v18 = vpop.f32.mrf.mxu0 }
 0x181   : > { %v508_v19 = vpop.f32.mrf.mxu0 }
 0x182   : > { %vm561_vm15 = vcmask 7168   ;;  %v998_v20 = vmov 0.0  }
 0x183   : > { %562 = vst.msk [vmem:[#allocation4] sm:$0xff] %vm561_vm15, %v998_v20  ;;  %563 = vst.msk [vmem:[#allocation5] sm:$0xff] %vm561_vm15, %v998_v20 }
 0x184 PF: > { %v564_v21 = vld [vmem:[%s1178_s2] sm:$0x7]  ;;  %v568_v22 = vsub.s32 0, %v1093_v4  ;;  %v572_v23 = vsub.s32 1, %v1093_v4  ;;  %v576_v24 = vsub.s32 2, %v1093_v4  ;;  %vm591_vm0 = vcmask 7168  }
 0x186   : > { %v569_v25 = vrot.slane %v564_v21, %v568_v22  ;;  %v573_v26 = vrot.slane %v564_v21, %v572_v23  ;;  %v577_v27 = vrot.slane %v564_v21, %v576_v24 }
 0x188   : > { %v581_v28 = vmul.f32 %v569_v25, %v503_v15  ;;  %v582_v29 = vmul.f32 %v573_v26, %v505_v17  ;;  %v583_v30 = vmul.f32 %v577_v27, %v544_v12 }
 0x18a   : > { %v585_v31 = vadd.f32 %v582_v29, %v581_v28  ;;  %v586_v32 = vsel %vm555_vm14, %v583_v30, 0.0  ;;  %v594_v33 = vmul.f32 %v581_v28, %v581_v28  ;;  %v595_v34 = vmul.f32 %v582_v29, %v582_v29  ;;  %v584_v4 = vld [vmem:[#allocation4] sm:$0xff]  ;;  %v593_v42 = vld [vmem:[#allocation5] sm:$0xff] }
 0x18b   : > { %v596_v35 = vmul.f32 %v583_v30, %v583_v30 }
 0x18c   : > { %v587_v36 = vadd.f32 %v586_v32, %v585_v31  ;;  %v597_v37 = vadd.f32 %v595_v34, %v594_v33 }
 0x18d   : > { %v598_v38 = vsel %vm555_vm14, %v596_v35, 0.0 }
 0x18e   : > { %588 = vadd.xlane.f32.xlu0 %v587_v36  ;;  %v599_v39 = vadd.f32 %v598_v38, %v597_v37 }
 0x192   : > { %600 = vadd.xlane.f32.xlu0 %v599_v39 }
 0x217   : > { %v589_v40 = vpop.xlane.xlu0 %588 }
 0x218   : > { %v590_v41 = vadd.f32 %v589_v40, %v584_v4 }
 0x21a   : > { %592 = vst.msk [vmem:[#allocation4] sm:$0xff] %vm591_vm0, %v590_v41 }
 0x21b   : > { %v601_v43 = vpop.xlane.xlu0 %600 }
 0x21c   : > { %v602_v44 = vadd.f32 %v601_v43, %v593_v42 }
 0x21e   : > { %603 = vst.msk [vmem:[#allocation5] sm:$0xff] %vm591_vm0, %v602_v44 }
 0x21f PF: > { %p841_p9 = scmp.ne.s32.totalorder %s972_s19, 1 }
 0x220   : > { %p842_p10 = scmp.ne.s32.totalorder (!%p841_p9), %s968_s18, 0 }
 0x221   : > { %607 = sbr.rel (%p841_p9) target bundleno = 870 (0x366), region = 52 }
 0x226   : > { %611 = sbr.rel (%p842_p10) target bundleno = 583 (0x247), region = 56 }
 0x22b   : > { %v612_v45 = vld [vmem:[#allocation4] sm:$0xff]  ;;  %v614_v46 = vld [vmem:[#allocation5] sm:$0xff]  ;;  %v620_v52 = vld [vmem:[%s1179_s3] sm:$0xff]  ;;  %vm622_vm1 = vcmask 7168  }
 0x22c   : > { %v613_v47 = vmul.f32 0.001953125, %v612_v45  ;;  %v615_v48 = vmul.f32 0.001953125, %v614_v46  ;;  %v624_v55 = vld [vmem:[%s1180_s4] sm:$0xff] }
 0x22e   : > { %v616_v49 = vmul.f32 %v613_v47, %v613_v47  ;;  %v626_v53 = vmul.f32 %v620_v52, %v613_v47 }
 0x230   : > { %v617_v50 = vsub.f32 %v615_v48, %v616_v49 }
 0x232   : > { %v618_v51 = vadd.f32 1e-05, %v617_v50 }
 0x234   : > { %943 = vrsqrt.f32 %v618_v51 }
 0x241   : > { %v944_v54 = vpop.eup %943 }
 0x242   : > { %v621_v56 = vmul.f32 %v944_v54, %v620_v52  ;;  %v627_v57 = vmul.f32 %v944_v54, %v626_v53 }
 0x244   : > { %623 = vst.msk [vmem:[#allocation6] sm:$0xff] %vm622_vm1, %v621_v56  ;;  %v628_v58 = vsub.f32 %v624_v55, %v627_v57 }
 0x246   : > { %629 = vst.msk [vmem:[#allocation7] sm:$0xff] %vm622_vm1, %v628_v58 }
 0x247 PF: > { %v999_v60 = vmov 0   ;;  %s848_s12 = smul.u32 24, %s968_s18  ;;  %vm663_vm2 = vcmask 130048   ;;  %s1000_s14 = smov 110   ;;  %vm669_vm6 = vcmask 261248   ;;  %vm674_vm7 = vcmask 392448  }
 0x248   : > { %945 = vset.pattern.permute.xlu0 %v999_v60  ;;  %s1001_s18 = smov 112   ;;  %s1002_s15 = smov 108   ;;  %vm679_vm8 = vcmask 523648   ;;  %vm684_vm9 = vcmask 654848   ;;  %vm689_vm10 = vcmask 786048   ;;  %vm735_vm11 = vcmask 818176  }
 0x249   : > { %s632_s13 = scalar_lea.vmem [#allocation3], %s848_s12  ;;  %s1003_s16 = smov 126   ;;  %vm694_vm12 = vcmask 917248   ;;  %vm704_vm13 = vcmask 1048448   ;;  %vm701_vm14 = vcmask 932864  }
 0x24a   : > { %v633_v63 = vld [vmem:[%s632_s13] sm:$0xff]  ;;  %v634_v0 = vld [vmem:[%s632_s13 + $0x8] sm:$0xff]  ;;  %v635_v11 = vld [vmem:[%s632_s13 + $0x10] sm:$0xff]  ;;  %s1004_s17 = smov 106   ;;  %s1005_s25 = smov 124  }
 0x24b   : > { %v636_v59 = vld [vmem:[#allocation6] sm:$0xff]  ;;  %s1006_s26 = smov 104   ;;  %s1007_s27 = smov 122  }
 0x24c   : > { %639 = vperm.xlu0 %945, %v636_v59   ;;  %s1008_s28 = smov 102   ;;  %s1009_s29 = smov 120  }
 0x24d   : > { %v645_v61 = vld [vmem:[#allocation7] sm:$0xff]  ;;  %s1010_s30 = smov 100   ;;  %s1011_s6 = smov 118  }
 0x24e   : > { %s1012_s7 = smov 114   ;;  %s1013_s9 = smov 98  }
 0x24f   : > { %s1014_s10 = smov 116  }
 0x250   : > { %648 = vperm.xlu0 %945, %v645_v61  }
 0x2c7   : > { %v640_v62 = vpop.permute.xlu0 %639 }
 0x2c8   : > { %v642_v1 = vmul.f32 %v640_v62, %v633_v63  ;;  %v643_v2 = vmul.f32 %v640_v62, %v634_v0  ;;  %v644_v12 = vmul.f32 %v640_v62, %v635_v11 }
 0x2cb   : > { %v649_v3 = vpop.permute.xlu0 %648 }
 0x2cc   : > { %v651_v5 = vadd.f32 %v649_v3, %v642_v1  ;;  %v652_v6 = vadd.f32 %v649_v3, %v643_v2  ;;  %v653_v13 = vadd.f32 %v649_v3, %v644_v12 }
 0x2ce   : > { %vm654_vm3 = vcmp.gt.f32.partialorder %v651_v5, 0.0  ;;  %vm655_vm4 = vcmp.gt.f32.partialorder %v652_v6, 0.0  ;;  %v657_v7 = vmul.f32 0.1, %v651_v5  ;;  %v658_v8 = vmul.f32 0.1, %v652_v6 }
 0x2cf   : > { %v659_v14 = vmul.f32 0.1, %v653_v13  ;;  %vm656_vm5 = vcmp.gt.f32.partialorder %v653_v13, 0.0 }
 0x2d0   : > { %v660_v9 = vsel %vm654_vm3, %v651_v5, %v657_v7  ;;  %v661_v10 = vsel %vm655_vm4, %v652_v6, %v658_v8 }
 0x2d1   : > { %710 = vrot.lane.b32.xlu0 %v661_v10, %s1000_s14  ;;  %706 = vrot.lane.b32.xlu1 %v661_v10, %s1001_s18  ;;  %664 = vst.msk [vmem:[%s1087_s8] sm:$0xff] %vm663_vm2, %v660_v9  ;;  %v662_v15 = vsel %vm656_vm5, %v653_v13, %v659_v14 }
 0x2d5   : > { %714 = vrot.lane.b32.xlu0 %v661_v10, %s1002_s15  ;;  %666 = vrot.lane.b32.xlu1 %v660_v9, %s1003_s16 }
 0x2d9   : > { %718 = vrot.lane.b32.xlu0 %v661_v10, %s1004_s17  ;;  %671 = vrot.lane.b32.xlu1 %v660_v9, %s1005_s25 }
 0x2dd   : > { %722 = vrot.lane.b32.xlu0 %v661_v10, %s1006_s26  ;;  %676 = vrot.lane.b32.xlu1 %v660_v9, %s1007_s27 }
 0x2e1   : > { %726 = vrot.lane.b32.xlu0 %v661_v10, %s1008_s28  ;;  %681 = vrot.lane.b32.xlu1 %v660_v9, %s1009_s29 }
 0x2e5   : > { %733 = vrot.lane.b32.xlu0 %v662_v15, %s1010_s30  ;;  %686 = vrot.lane.b32.xlu1 %v660_v9, %s1011_s6 }
 0x2e9   : > { %697 = vrot.lane.b32.xlu0 %v660_v9, %s1012_s7  ;;  %731 = vrot.lane.b32.xlu1 %v661_v10, %s1010_s30 }
 0x2ed   : > { %739 = vrot.lane.b32.xlu0 %v662_v15, %s1013_s9  ;;  %691 = vrot.lane.b32.xlu1 %v660_v9, %s1014_s10 }
 0x2f1   : > { %699 = vrot.lane.b32.xlu1 %v661_v10, %s1012_s7 }
 0x343   : > { %v711_v16 = vpop.permute.xlu0 %710  ;;  %v707_v17 = vpop.permute.xlu1 %706 }
 0x344   : > { %709 = vst.msk [vmem:[%s1087_s8 + $0x8] sm:$0xff] %vm663_vm2, %v707_v17 }
 0x345   : > { %713 = vst.msk [vmem:[%s1087_s8 + $0x8] sm:$0xff] %vm669_vm6, %v711_v16 }
 0x347   : > { %v715_v18 = vpop.permute.xlu0 %714  ;;  %v667_v19 = vpop.permute.xlu1 %666 }
 0x348   : > { %717 = vst.msk [vmem:[%s1087_s8 + $0x8] sm:$0xff] %vm674_vm7, %v715_v18 }
 0x349   : > { %670 = vst.msk [vmem:[%s1087_s8] sm:$0xff] %vm669_vm6, %v667_v19 }
 0x34b   : > { %v719_v20 = vpop.permute.xlu0 %718  ;;  %v672_v21 = vpop.permute.xlu1 %671 }
 0x34c   : > { %721 = vst.msk [vmem:[%s1087_s8 + $0x8] sm:$0xff] %vm679_vm8, %v719_v20 }
 0x34d   : > { %675 = vst.msk [vmem:[%s1087_s8] sm:$0xff] %vm674_vm7, %v672_v21 }
 0x34f   : > { %v723_v22 = vpop.permute.xlu0 %722  ;;  %v677_v23 = vpop.permute.xlu1 %676 }
 0x350   : > { %725 = vst.msk [vmem:[%s1087_s8 + $0x8] sm:$0xff] %vm684_vm9, %v723_v22 }
 0x351   : > { %680 = vst.msk [vmem:[%s1087_s8] sm:$0xff] %vm679_vm8, %v677_v23 }
 0x353   : > { %v727_v24 = vpop.permute.xlu0 %726  ;;  %v682_v25 = vpop.permute.xlu1 %681 }
 0x354   : > { %729 = vst.msk [vmem:[%s1087_s8 + $0x8] sm:$0xff] %vm689_vm10, %v727_v24 }
 0x355   : > { %685 = vst.msk [vmem:[%s1087_s8] sm:$0xff] %vm684_vm9, %v682_v25 }
 0x357   : > { %v734_v26 = vpop.permute.xlu0 %733  ;;  %v687_v27 = vpop.permute.xlu1 %686 }
 0x358   : > { %690 = vst.msk [vmem:[%s1087_s8] sm:$0xff] %vm689_vm10, %v687_v27 }
 0x35b   : > { %v698_v28 = vpop.permute.xlu0 %697  ;;  %v732_v29 = vpop.permute.xlu1 %731 }
 0x35c   : > { %v736_v30 = vsel %vm735_vm11, %v732_v29, %v734_v26 }
 0x35d   : > { %738 = vst.msk [vmem:[%s1087_s8 + $0x8] sm:$0xff] %vm694_vm12, %v736_v30 }
 0x35f   : > { %v740_v31 = vpop.permute.xlu0 %739  ;;  %v692_v32 = vpop.permute.xlu1 %691 }
 0x360   : > { %742 = vst.msk [vmem:[%s1087_s8 + $0x8] sm:$0xff] %vm704_vm13, %v740_v31 }
 0x361   : > { %695 = vst.msk [vmem:[%s1087_s8] sm:$0xff] %vm694_vm12, %v692_v32 }
 0x363   : > { %v700_v33 = vpop.permute.xlu1 %699 }
 0x364   : > { %v702_v34 = vsel %vm701_vm14, %v698_v28, %v700_v33 }
 0x365   : > { %705 = vst.msk [vmem:[%s1087_s8] sm:$0xff] %vm704_vm13, %v702_v34 }
 0x366 PF: > { %s15_s22 = sadd.s32 1, %s984_s22   ;;  %s1182_s18 = smov %s976_s20 }
 0x367   : > { %p12_p11 = scmp.ge.s32.totalorder %s15_s22, 6   ;;  %s1183_s19 = smov %s980_s21 }
 0x368   : > { %s1184_s20 = smov %s1187_s23  ;;  %s1185_s21 = smov %s1191_s24 }
 0x369   :  { %14 = sbr.rel (!%p12_p11) target bundleno = 3 (0x3), region = 88 }

</bundles_post_ra>
